<compile_context>
chip_gen: v7x
topology: tpu7x:2x2x1
jax: 0.10.0
libtpu: 0.0.40
codegen_flags: <defaults>
</compile_context>

<pallas_src>
import functools

import jax
import jax.numpy as jnp
from jax.experimental import pallas as pl
from jax.experimental.pallas import tpu as pltpu


# ----------------------------------------------------------------------------
# Kernel body
# ----------------------------------------------------------------------------
def _fused_leaky_relu_kernel(x_ref, b_ref, o_ref, *, negative_slope, scale):
    # x_ref: (tile_r, tile_l); b_ref: (tile_r, 1) or (1, tile_l) -> broadcasts.
    x = x_ref[...] + b_ref[...]
    if 0.0 <= negative_slope <= 1.0:
        # leaky_relu(x) == max(x, slope * x) for 0 <= slope <= 1: one mul + max
        # instead of compare + select (static Python branch, default slope=0.2).
        y = jnp.maximum(x, x * negative_slope)
    else:
        y = jnp.where(x >= 0, x, x * negative_slope)
    o_ref[...] = (y * scale).astype(o_ref.dtype)


# ----------------------------------------------------------------------------
# Tiling: byte-budget driven, pl.cdiv grid (handles ragged last blocks)
# ----------------------------------------------------------------------------
_DEFAULT_BLOCK_BYTES = 2 * 1024 * 1024  # 2 MiB per block -> ~8 MiB of VMEM
                                        # buffers (double-buffered in+out):
                                        # safe on v5e/v6e/v7x default limits.


def _pick_tiles(R, L, itemsize, block_bytes):
    # Lane tile: full last dim if it fits (always satisfies the lane rule);
    # otherwise a multiple of 128 sized so >=8 rows still fit the budget.
    max_lane_elems = max(128, block_bytes // (8 * itemsize))
    if L <= max_lane_elems:
        lane_tile = L
    else:
        lane_tile = (max_lane_elems // 128) * 128
    # Row tile: fill the remaining byte budget, multiple of 8 sublanes,
    # clamped to the full row extent.
    rows = max(8, block_bytes // (lane_tile * itemsize))
    row_tile = (rows // 8) * 8
    if row_tile >= R:
        row_tile = R
    return row_tile, lane_tile


def _call_2d(x2, b2, negative_slope, scale, *, bias_axis,
             block_bytes=_DEFAULT_BLOCK_BYTES):
    """x2: (R, L).  bias_axis=0 -> b2 is (R, 1); bias_axis=1 -> b2 is (1, L)."""
    R, L = x2.shape
    itemsize = x2.dtype.itemsize
    row_tile, lane_tile = _pick_tiles(R, L, itemsize, block_bytes)
    grid = (pl.cdiv(R, row_tile), pl.cdiv(L, lane_tile))

    if bias_axis == 0:
        b_spec = pl.BlockSpec((row_tile, 1), lambda i, j: (i, 0))
    else:
        b_spec = pl.BlockSpec((1, lane_tile), lambda i, j: (0, j))

    kernel = functools.partial(
        _fused_leaky_relu_kernel, negative_slope=negative_slope, scale=scale
    )
    return pl.pallas_call(
        kernel,
        out_shape=jax.ShapeDtypeStruct((R, L), x2.dtype),
        grid=grid,
        in_specs=[
            pl.BlockSpec((row_tile, lane_tile), lambda i, j: (i, j)),
            b_spec,
        ],
        out_specs=pl.BlockSpec((row_tile, lane_tile), lambda i, j: (i, j)),
        compiler_params=pltpu.CompilerParams(
            dimension_semantics=("parallel", "parallel"),
        ),
    )(x2, b2)


# ----------------------------------------------------------------------------
# PyTorch-compatible wrapper
# ----------------------------------------------------------------------------
def fused_leaky_relu(x, bias, negative_slope=0.2, scale=2 ** 0.5):
    """Matches PyTorch fused_leaky_relu:
      - x.ndim == 3: bias broadcast on the LAST axis (bias.view(1, 1, C))
      - otherwise : bias broadcast on axis 1    (bias.view(1, C, 1, ...))
    """
    x = jnp.asarray(x)
    bias = jnp.asarray(bias).astype(x.dtype)
    C = bias.shape[0]

    if x.ndim == 3:
        B, L, Cx = x.shape
        assert Cx == C, "bias must match the last dim for 3D inputs"
        x2 = x.reshape(B * L, C)                      # no data movement
        out2 = _call_2d(x2, bias.reshape(1, C), negative_slope, scale,
                        bias_axis=1)
        return out2.reshape(B, L, C)

    assert x.ndim >= 2 and x.shape[1] == C, "bias must match dim 1"
    N = x.shape[0]
    spatial = 1
    for d in x.shape[2:]:
        spatial *= d

    if spatial == 1:
        # (N, C): channels already on the last axis.
        x2 = x.reshape(N, C)
        out2 = _call_2d(x2, bias.reshape(1, C), negative_slope, scale,
                        bias_axis=1)
    else:
        # NCHW...: reshape (no transpose) to (N*C, H*W*...) — spatial on the
        # lane axis; bias becomes a tiny per-row column broadcast over lanes.
        x2 = x.reshape(N * C, spatial)
        b_col = jnp.tile(bias, N).reshape(N * C, 1)   # bias[row % C]
        out2 = _call_2d(x2, b_col, negative_slope, scale, bias_axis=0)
    return out2.reshape(x.shape)


class FusedLeakyReLU:
    """JAX/Pallas port of the PyTorch FusedLeakyReLU module."""

    def __init__(self, channel, negative_slope=0.2, scale=2 ** 0.5):
        # nn.Parameter(torch.zeros(channel)) -> deterministic zeros init.
        self.bias = jnp.zeros((channel,), dtype=jnp.float32)
        self.negative_slope = negative_slope
        self.scale = scale

    def __call__(self, x):
        return fused_leaky_relu(x, self.bias, self.negative_slope, self.scale)


# ----------------------------------------------------------------------------
# Pure-JAX reference
# ----------------------------------------------------------------------------
def _ref_fused_leaky_relu(x, bias, negative_slope=0.2, scale=2 ** 0.5):
    x = jnp.asarray(x)
    if x.ndim == 3:
        b = bias.reshape(1, 1, bias.shape[0])
    else:
        b = bias.reshape((1, bias.shape[0]) + (1,) * (x.ndim - 2))
    z = x + b
    return jnp.where(z >= 0, z, z * negative_slope) * scale


if __name__ == "__main__":
    key = jax.random.PRNGKey(0)
    k1, k2, k3, k4 = jax.random.split(key, 4)

    # --- 4D NCHW path (conv feature maps): bias broadcast over axis 1 ------
    N, C, H, W = 2, 4, 16, 16
    x4 = jax.random.normal(k1, (N, C, H, W), dtype=jnp.float32)
    mod = FusedLeakyReLU(C)
    # Non-trivial bias so the bias-add path is actually exercised.
    mod.bias = jax.random.normal(k2, (C,), dtype=jnp.float32) * 0.1
    out4 = jax.block_until_ready(mod(x4))
    ref4 = _ref_fused_leaky_relu(x4, mod.bias, mod.negative_slope, mod.scale)
    assert out4.shape == x4.shape
    assert jnp.allclose(out4, ref4, atol=1e-5, rtol=1e-5)

    # --- 3D (B, L, C) path: bias broadcast over the last axis --------------
    B, L, Hd = 2, 8, 32
    x3 = jax.random.normal(k3, (B, L, Hd), dtype=jnp.float32)
    mod3 = FusedLeakyReLU(Hd)
    mod3.bias = jax.random.normal(k4, (Hd,), dtype=jnp.float32) * 0.1
    out3 = jax.block_until_ready(mod3(x3))
    ref3 = _ref_fused_leaky_relu(x3, mod3.bias, mod3.negative_slope, mod3.scale)
    assert out3.shape == x3.shape
    assert jnp.allclose(out3, ref3, atol=1e-5, rtol=1e-5)

    # --- Multi-block / ragged pl.cdiv grid check (small block budget) ------
    xr = jax.random.normal(k1, (100, 384), dtype=jnp.float32)
    br = jax.random.normal(k2, (100, 1), dtype=jnp.float32) * 0.1
    outr = jax.block_until_ready(
        _call_2d(xr, br, 0.2, 2 ** 0.5, bias_axis=0, block_bytes=64 * 1024)
    )
    zr = xr + br
    refr = jnp.where(zr >= 0, zr, zr * 0.2) * (2 ** 0.5)
    assert jnp.allclose(outr, refr, atol=1e-5, rtol=1e-5)

    print("KERNEL_OK")
</pallas_src>

<mosaic_0001>
module attributes {stable_mosaic.version = 11 : i64} {
  func.func @_fused_leaky_relu_kernel(%arg0: i32, %arg1: i32, %arg2: memref<8x256xf32, #tpu.memory_space<vmem>>, %arg3: memref<8x1xf32, #tpu.memory_space<vmem>>, %arg4: memref<8x256xf32, #tpu.memory_space<vmem>>) attributes {dimension_semantics = [#tpu.dimension_semantics<parallel>, #tpu.dimension_semantics<parallel>], iteration_bounds = array<i64: 1, 1>, scalar_prefetch = 0 : i64, scratch_operands = 0 : i64, tpu.core_type = #tpu.core_type<tc>, window_params = [{transform_indices = @transform_0, window_bounds = array<i64: 8, 256>}, {transform_indices = @transform_1, window_bounds = array<i64: 8, 1>}, {transform_indices = @transform_2, window_bounds = array<i64: 8, 256>}]} {
    %c0 = arith.constant 0 : index
    %c0_0 = arith.constant 0 : index
    %0 = vector.load %arg2[%c0, %c0_0] : memref<8x256xf32, #tpu.memory_space<vmem>>, vector<8x256xf32>
    %c0_1 = arith.constant 0 : index
    %c0_2 = arith.constant 0 : index
    %1 = vector.load %arg3[%c0_1, %c0_2] : memref<8x1xf32, #tpu.memory_space<vmem>>, vector<8x1xf32>
    %2 = vector.broadcast %1 : vector<8x1xf32> to vector<8x256xf32>
    %3 = arith.addf %0, %2 : vector<8x256xf32>
    %cst = arith.constant 2.000000e-01 : f32
    %4 = vector.broadcast %cst : f32 to vector<8x256xf32>
    %5 = arith.mulf %3, %4 : vector<8x256xf32>
    %6 = arith.maximumf %3, %5 : vector<8x256xf32>
    %cst_3 = arith.constant 1.41421354 : f32
    %7 = vector.broadcast %cst_3 : f32 to vector<8x256xf32>
    %8 = arith.mulf %6, %7 : vector<8x256xf32>
    %c0_4 = arith.constant 0 : index
    %c0_5 = arith.constant 0 : index
    %9 = vector.load %arg4[%c0_4, %c0_5] : memref<8x256xf32, #tpu.memory_space<vmem>>, vector<8x256xf32>
    tpu.vector_store %arg4[%c0_4, %c0_5], %8 {strides = array<i32>} : memref<8x256xf32, #tpu.memory_space<vmem>>, vector<8x256xf32>,
    return
  }
  func.func @transform_0(%arg0: i32, %arg1: i32) -> (i32, i32) {
    %c0_i32 = arith.constant 0 : i32
    return %arg0, %arg1 : i32, i32
  }
  func.func @transform_1(%arg0: i32, %arg1: i32) -> (i32, i32) {
    %c0_i32 = arith.constant 0 : i32
    %c0_i32_0 = arith.constant 0 : i32
    return %arg0, %c0_i32 : i32, i32
  }
  func.func @transform_2(%arg0: i32, %arg1: i32) -> (i32, i32) {
    %c0_i32 = arith.constant 0 : i32
    return %arg0, %arg1 : i32, i32
  }
}

</mosaic_0001>

<bundles_post_ra>
// kernel: tpu_custom_call.1
= control target key start
LH: loop header
LB: loop body
LE: loop exit
PB: predicated region body
PF: predicated region fallthrough
CT: control target
= control target key end

     0   :  { %7 = vsyncpa [#allocation3], 0  ;;  %s154_s0 = inlined_call_operand.hbm [shape: f32[8,256], index: 0, kind: input, shape index: {}]   ;;  %s155_s1 = inlined_call_operand.vmem [shape: f32[8,1], index: 1, kind: input, shape index: {}]   ;;  %s156_s2 = inlined_call_operand.hbm [shape: f32[8,256], index: 2, kind: output, shape index: {}]  }
   0x1   :  { %8 = vsyncpa [#allocation4], 0  ;;  %s109_s9 = smov [#allocation2]   ;;  %s61_s13 = scalar_lea.hbm %s154_s0, 256 }
   0x2   :  { %s15_s10 = sshll.u32 %s109_s9, 4  ;;  %p62_p0 = scmp.ne.s32.totalorder %s154_s0, %s61_s13  ;;  %s16_s10 = int_to_ptr.vmem [resolvable:$true] %s15_s10 }
   0x3   :  { %p65_p1 = scmp.lt.u32.totalorder %s61_s13, %s154_s0 }
   0x5   :  { %p67_p2 = pnand %p65_p1, %p62_p0 }
   0x7   :  { %70 = shalt.err (!%p67_p2)
}
   0x8   :  { %s71_s18 = scalar_lea.vmem %s16_s10, 256  ;;  %p76_p4 = scmp.lt.s32.totalorder %s16_s10, %s16_s10 }
   0x9   :  { %p72_p3 = scmp.ne.s32.totalorder %s16_s10, %s71_s18  ;;  %p77_p5 = scmp.lt.s32.totalorder %s71_s18, %s71_s18 }
   0xb   :  { %p78_p6 = por %p77_p5, %p76_p4 }
   0xd   :  { %p79_p7 = pnand %p78_p6, %p72_p3 }
   0xf   :  { %82 = shalt.err (!%p79_p7)
}
  0x10   :  { %18 = dma.hbm_to_vmem [thread:$0]  %s154_s0, 256, %s16_s10, [#allocation3]  }
  0x11   :  { %105 = dma.done.wait [#allocation3], 256  }
  0x12   :  { %106 = vsyncadd [#allocation3], 4294967040  ;;  %v110_v0 = vmov 0   ;;  %v26_v1 = vld [vmem:[%s155_s1] sm:$0xff]  ;;  %v25_v3 = vld [vmem:[#allocation2 + $0x8] sm:$0xff]  ;;  %s111_s23 = smov [#allocation5]  }
  0x13   :  { %60 = vset.pattern.permute.xlu0 %v110_v0  ;;  %v24_v2 = vld [vmem:[#allocation2] sm:$0xff]  ;;  %s48_s24 = sshll.u32 %s111_s23, 4  ;;  %s49_s24 = int_to_ptr.vmem [resolvable:$true] %s48_s24 }
  0x14   :  { %29 = vperm.xlu0 %60, %v26_v1   ;;  %s83_s0 = scalar_lea.vmem %s49_s24, 256  ;;  %p88_p9 = scmp.lt.s32.totalorder %s49_s24, %s49_s24 }
  0x15   :  { %p84_p8 = scmp.ne.s32.totalorder %s49_s24, %s83_s0  ;;  %p89_p10 = scmp.lt.s32.totalorder %s83_s0, %s83_s0 }
  0x17   :  { %p90_p11 = por %p89_p10, %p88_p9 }
  0x19   :  { %p91_p12 = pnand %p90_p11, %p84_p8 }
  0x93   :  { %v30_v4 = vpop.permute.xlu0 %29 }
  0x94   :  { %v32_v5 = vadd.f32 %v30_v4, %v24_v2  ;;  %v33_v6 = vadd.f32 %v30_v4, %v25_v3 }
  0x96   :  { %v34_v7 = vmul.f32 0.2, %v32_v5  ;;  %v35_v8 = vmul.f32 0.2, %v33_v6 }
  0x98   :  { %v36_v9 = vmax.f32 %v32_v5, %v34_v7  ;;  %v37_v10 = vmax.f32 %v33_v6, %v35_v8 }
  0x9a   :  { %v38_v11 = vmul.f32 1.4142135, %v36_v9  ;;  %v39_v12 = vmul.f32 1.4142135, %v37_v10 }
  0x9c   :  { %40 = vst [vmem:[#allocation5] sm:$0xff] %v38_v11  ;;  %41 = vst [vmem:[#allocation5 + $0x8] sm:$0xff] %v39_v12 }
  0x9d   :  { %94 = shalt.err (!%p91_p12)
}
  0x9e   :  { %s95_s26 = scalar_lea.hbm %s156_s2, 256 }
  0x9f   :  { %p96_p13 = scmp.ne.s32.totalorder %s156_s2, %s95_s26  ;;  %p99_p0 = scmp.lt.u32.totalorder %s95_s26, %s156_s2 }
  0xa1   :  { %p101_p1 = pnand %p99_p0, %p96_p13 }
  0xa3   :  { %104 = shalt.err (!%p101_p1)
}
  0xa4   :  { %51 = dma.vmem_to_hbm [thread:$0]  %s49_s24, 256, %s156_s2, [#allocation4]  }
  0xa5   :  { %107 = dma.done.wait [#allocation4], 256  }
  0xa6   :  { %108 = vsyncadd [#allocation4], 4294967040 }
  0xa7   :  { %55 = vsyncpa [#allocation3], 1 }
  0xa8   :  { %56 = vsyncpa [#allocation4], 1 }

</bundles_post_ra>
